<compile_context>
chip_gen: v6e
topology: v6e:2x2x1
jax: 0.10.0
libtpu: 0.0.40
codegen_flags: <defaults>
</compile_context>

<pallas_src>
import math

import jax
import jax.numpy as jnp
from jax.experimental import pallas as pl
from jax.experimental.pallas import tpu as pltpu

_NEG_LOG_1E4 = -math.log(1e-4)  # -log(clip floor applied to the one-hot labels)


def _round_up(x, m):
    return ((x + m - 1) // m) * m


def _sce_loss_kernel(pred_ref, labels_ref, out_ref):
    """pred_ref: (C, TN) f32 logits (class-major).  labels_ref: (1, TN) i32.

    Writes a (1, 8, 128) partial block: sublane 0 = sum of CE over this tile,
    sublane 1 = sum of RCE over this tile (padded columns excluded).
    """
    c, tn = pred_ref.shape
    pred = pred_ref[...].astype(jnp.float32)          # (C, TN)
    labels = labels_ref[...]                           # (1, TN) int32

    # One-hot mask via a sublane iota over the class axis.
    class_iota = jax.lax.broadcasted_iota(jnp.int32, (c, tn), 0)
    onehot = class_iota == labels                      # (C, TN) bool

    # Numerically-stable softmax pieces; exp over the full tile exactly once.
    col_max = jnp.max(pred, axis=0, keepdims=True)     # (1, TN)
    shifted = pred - col_max                            # (C, TN)
    shifted_at_label = jnp.sum(jnp.where(onehot, shifted, 0.0),
                               axis=0, keepdims=True)   # (1, TN)

    exp_shifted = jnp.exp(shifted)                       # (C, TN)
    denom = jnp.sum(exp_shifted, axis=0, keepdims=True)  # (1, TN)
    # Exact reciprocal: it only runs on the (1, TN) row (1/C of the elements),
    # so approx=True buys nothing here and exact keeps tight tolerances.
    inv_denom = pl.reciprocal(denom, approx=False)       # (1, TN)

    # --- cross entropy: -log_softmax at the label class --------------------
    ce_per_col = jnp.log(denom) - shifted_at_label       # (1, TN)

    # --- reverse cross entropy ---------------------------------------------
    # log(clip(one_hot, 1e-4, 1)) is 0 at the label class and log(1e-4)
    # elsewhere, so rce = -log(1e-4) * (sum(clipped_probs) - clipped_prob_at_label).
    probs = jnp.maximum(exp_shifted * inv_denom, 1e-07)             # (C, TN)
    probs_sum = jnp.sum(probs, axis=0, keepdims=True)                # (1, TN)
    probs_at_label = jnp.maximum(jnp.exp(shifted_at_label) * inv_denom, 1e-07)
    rce_per_col = _NEG_LOG_1E4 * (probs_sum - probs_at_label)        # (1, TN)

    # Padded columns carry label == -1; masking happens on (1, TN) rows only.
    valid = labels >= 0
    ce_tile = jnp.sum(jnp.where(valid, ce_per_col, 0.0),
                      axis=1, keepdims=True)             # (1, 1)
    rce_tile = jnp.sum(jnp.where(valid, rce_per_col, 0.0),
                       axis=1, keepdims=True)            # (1, 1)

    # Per-tile partial output block: sublane 0 = ce sum, sublane 1 = rce sum.
    row = jax.lax.broadcasted_iota(jnp.int32, (8, 128), 0)
    zeros = jnp.zeros((8, 128), jnp.float32)
    out_ref[0] = jnp.where(row == 0, ce_tile,
                           jnp.where(row == 1, rce_tile, zeros))


def sce_loss(pred, labels, alpha, beta, num_classes=10, block_cols=32768):
    """pred: (N, C) float logits, labels: (N,) int labels. Returns scalar f32 loss.

    block_cols = samples streamed per grid step.  Default 32768 keeps the
    VMEM working set ~20-26 MiB (safe under a 48 MiB limit on v7x's 64 MiB
    physical VMEM).  On v5e/v6e (128 MiB VMEM) it can be raised to 64-128K
    together with vmem_limit_bytes for a few extra % of HBM roofline.
    """
    n, c = pred.shape
    assert c == num_classes

    block_cols = max(128, _round_up(int(block_cols), 128))
    num_tiles = pl.cdiv(n, block_cols)
    tn = _round_up(pl.cdiv(n, num_tiles), 128)     # lane-aligned tile width
    n_pad = tn * num_tiles                         # no partial blocks

    # Class-major, lane-dense layout: (N, C) -> (C, N_pad); labels -> (1, N_pad)
    # with -1 sentinels on padded columns (used as the validity mask in-kernel).
    pred_t = jnp.pad(pred.astype(jnp.float32).T, ((0, 0), (0, n_pad - n)))
    labels_row = jnp.pad(labels.astype(jnp.int32), (0, n_pad - n),
                         constant_values=-1).reshape(1, n_pad)

    partials = pl.pallas_call(
        _sce_loss_kernel,
        out_shape=jax.ShapeDtypeStruct((num_tiles, 8, 128), jnp.float32),
        grid=(num_tiles,),
        in_specs=[
            pl.BlockSpec((c, tn), lambda i: (0, i)),    # class-major logits tile
            pl.BlockSpec((1, tn), lambda i: (0, i)),    # label row tile
        ],
        out_specs=pl.BlockSpec((1, 8, 128), lambda i: (i, 0, 0)),
        compiler_params=pltpu.CompilerParams(
            # Per-tile partial outputs -> no cross-grid state -> both v7x
            # TensorCores can split the grid.
            dimension_semantics=("parallel",),
            vmem_limit_bytes=48 * 1024 * 1024,
        ),
    )(pred_t, labels_row)

    # Tiny final reduction + alpha/beta/N applied outside the kernel.
    ce_sum = jnp.sum(partials[:, 0, 0])
    rce_sum = jnp.sum(partials[:, 1, 0])
    return (alpha * ce_sum + beta * rce_sum) / n


def _reference_sce_loss(pred, labels, alpha, beta, num_classes):
    # Pure-JAX reference mirroring the PyTorch module.
    logp = jax.nn.log_softmax(pred, axis=1)
    ce = -jnp.mean(jnp.take_along_axis(logp, labels[:, None], axis=1))
    probs = jnp.clip(jax.nn.softmax(pred, axis=1), 1e-07, 1.0)
    onehot = jnp.clip(jax.nn.one_hot(labels, num_classes), 1e-4, 1.0)
    rce = -jnp.sum(probs * jnp.log(onehot), axis=1)
    return alpha * ce + beta * jnp.mean(rce)


if __name__ == "__main__":
    num_classes = 10
    batch = 300                 # small; block_cols=128 exercises 3 tiles + padding mask
    alpha, beta = 0.1, 1.0

    key = jax.random.PRNGKey(0)
    k_pred, k_lab = jax.random.split(key)
    pred = jax.random.normal(k_pred, (batch, num_classes), dtype=jnp.float32)
    labels = jax.random.randint(k_lab, (batch,), 0, num_classes, dtype=jnp.int32)

    ref = _reference_sce_loss(pred, labels, alpha, beta, num_classes)

    # Multi-tile path (3 parallel tiles, 84 masked pad columns).
    loss_multi = sce_loss(pred, labels, alpha, beta, num_classes, block_cols=128)
    loss_multi = jax.block_until_ready(loss_multi)
    assert jnp.allclose(loss_multi, ref, rtol=1e-5, atol=1e-5), (loss_multi, ref)

    # Default (single-tile) path.
    loss_single = sce_loss(pred, labels, alpha, beta, num_classes)
    loss_single = jax.block_until_ready(loss_single)
    assert jnp.allclose(loss_single, ref, rtol=1e-5, atol=1e-5), (loss_single, ref)

    print("KERNEL_OK")
</pallas_src>

<mosaic_0001>
module attributes {stable_mosaic.version = 11 : i64} {
  func.func @_sce_loss_kernel(%arg0: i32, %arg1: memref<10x128xf32, #tpu.memory_space<vmem>>, %arg2: memref<1x128xi32, #tpu.memory_space<vmem>>, %arg3: memref<1x8x128xf32, #tpu.memory_space<vmem>>) attributes {dimension_semantics = [#tpu.dimension_semantics<parallel>], iteration_bounds = array<i64: 3>, scalar_prefetch = 0 : i64, scratch_operands = 0 : i64, tpu.core_type = #tpu.core_type<tc>, window_params = [{transform_indices = @transform_0, window_bounds = array<i64: 10, 128>}, {transform_indices = @transform_1, window_bounds = array<i64: 1, 128>}, {transform_indices = @transform_2, window_bounds = array<i64: 1, 8, 128>}]} {
    %c0 = arith.constant 0 : index
    %c0_0 = arith.constant 0 : index
    %0 = vector.load %arg1[%c0, %c0_0] : memref<10x128xf32, #tpu.memory_space<vmem>>, vector<10x128xf32>
    %c0_1 = arith.constant 0 : index
    %c0_2 = arith.constant 0 : index
    %1 = vector.load %arg2[%c0_1, %c0_2] : memref<1x128xi32, #tpu.memory_space<vmem>>, vector<1x128xi32>
    %2 = tpu.iota {dimensions = array<i32: 0>} : vector<10x128xi32>
    %3 = vector.broadcast %1 : vector<1x128xi32> to vector<10x128xi32>
    %4 = arith.cmpi eq, %2, %3 : vector<10x128xi32>
    %cst = arith.constant dense<0xFF800000> : vector<128xf32>
    %5 = vector.multi_reduction <maximumf>, %0, %cst [0] : vector<10x128xf32> to vector<128xf32>
    %6 = vector.shape_cast %5 : vector<128xf32> to vector<1x128xf32>
    %7 = vector.broadcast %6 : vector<1x128xf32> to vector<10x128xf32>
    %8 = arith.subf %0, %7 : vector<10x128xf32>
    %cst_3 = arith.constant 0.000000e+00 : f32
    %9 = vector.broadcast %cst_3 : f32 to vector<10x128xf32>
    %10 = arith.select %4, %8, %9 : vector<10x128xi1>, vector<10x128xf32>
    %cst_4 = arith.constant dense<0.000000e+00> : vector<128xf32>
    %11 = vector.multi_reduction <add>, %10, %cst_4 [0] : vector<10x128xf32> to vector<128xf32>
    %12 = vector.shape_cast %11 : vector<128xf32> to vector<1x128xf32>
    %13 = math.exp %8 : vector<10x128xf32>
    %cst_5 = arith.constant dense<0.000000e+00> : vector<128xf32>
    %14 = vector.multi_reduction <add>, %13, %cst_5 [0] : vector<10x128xf32> to vector<128xf32>
    %15 = vector.shape_cast %14 : vector<128xf32> to vector<1x128xf32>
    %16 = tpu.reciprocal %15 : vector<1x128xf32> -> vector<1x128xf32>
    %17 = math.log %15 : vector<1x128xf32>
    %18 = arith.subf %17, %12 : vector<1x128xf32>
    %19 = vector.broadcast %16 : vector<1x128xf32> to vector<10x128xf32>
    %20 = arith.mulf %13, %19 : vector<10x128xf32>
    %cst_6 = arith.constant 1.000000e-07 : f32
    %21 = vector.broadcast %cst_6 : f32 to vector<10x128xf32>
    %22 = arith.maximumf %20, %21 : vector<10x128xf32>
    %cst_7 = arith.constant dense<0.000000e+00> : vector<128xf32>
    %23 = vector.multi_reduction <add>, %22, %cst_7 [0] : vector<10x128xf32> to vector<128xf32>
    %24 = vector.shape_cast %23 : vector<128xf32> to vector<1x128xf32>
    %25 = math.exp %12 : vector<1x128xf32>
    %26 = arith.mulf %25, %16 : vector<1x128xf32>
    %cst_8 = arith.constant 1.000000e-07 : f32
    %27 = vector.broadcast %cst_8 : f32 to vector<1x128xf32>
    %28 = arith.maximumf %26, %27 : vector<1x128xf32>
    %29 = arith.subf %24, %28 : vector<1x128xf32>
    %cst_9 = arith.constant 9.21034049 : f32
    %30 = vector.broadcast %cst_9 : f32 to vector<1x128xf32>
    %31 = arith.mulf %30, %29 : vector<1x128xf32>
    %c0_i32 = arith.constant 0 : i32
    %32 = vector.broadcast %c0_i32 : i32 to vector<1x128xi32>
    %33 = arith.cmpi sge, %1, %32 : vector<1x128xi32>
    %cst_10 = arith.constant 0.000000e+00 : f32
    %34 = vector.broadcast %cst_10 : f32 to vector<1x128xf32>
    %35 = arith.select %33, %18, %34 : vector<1x128xi1>, vector<1x128xf32>
    %cst_11 = arith.constant dense<0.000000e+00> : vector<1xf32>
    %36 = vector.multi_reduction <add>, %35, %cst_11 [1] : vector<1x128xf32> to vector<1xf32>
    %37 = vector.shape_cast %36 : vector<1xf32> to vector<1x1xf32>
    %cst_12 = arith.constant 0.000000e+00 : f32
    %38 = vector.broadcast %cst_12 : f32 to vector<1x128xf32>
    %39 = arith.select %33, %31, %38 : vector<1x128xi1>, vector<1x128xf32>
    %cst_13 = arith.constant dense<0.000000e+00> : vector<1xf32>
    %40 = vector.multi_reduction <add>, %39, %cst_13 [1] : vector<1x128xf32> to vector<1xf32>
    %41 = vector.shape_cast %40 : vector<1xf32> to vector<1x1xf32>
    %42 = tpu.iota {dimensions = array<i32: 0>} : vector<8x128xi32>
    %cst_14 = arith.constant 0.000000e+00 : f32
    %43 = vector.broadcast %cst_14 : f32 to vector<8x128xf32>
    %c0_i32_15 = arith.constant 0 : i32
    %44 = vector.broadcast %c0_i32_15 : i32 to vector<8x128xi32>
    %45 = arith.cmpi eq, %42, %44 : vector<8x128xi32>
    %c1_i32 = arith.constant 1 : i32
    %46 = vector.broadcast %c1_i32 : i32 to vector<8x128xi32>
    %47 = arith.cmpi eq, %42, %46 : vector<8x128xi32>
    %48 = vector.shape_cast %41 : vector<1x1xf32> to vector<1x1xf32>
    %49 = vector.broadcast %48 : vector<1x1xf32> to vector<8x128xf32>
    %50 = arith.select %47, %49, %43 : vector<8x128xi1>, vector<8x128xf32>
    %51 = vector.shape_cast %37 : vector<1x1xf32> to vector<1x1xf32>
    %52 = vector.broadcast %51 : vector<1x1xf32> to vector<8x128xf32>
    %53 = arith.select %45, %52, %50 : vector<8x128xi1>, vector<8x128xf32>
    %c0_16 = arith.constant 0 : index
    %c0_17 = arith.constant 0 : index
    %c0_18 = arith.constant 0 : index
    %54 = vector.load %arg3[%c0_16, %c0_17, %c0_18] : memref<1x8x128xf32, #tpu.memory_space<vmem>>, vector<1x8x128xf32>
    %55 = vector.shape_cast %54 : vector<1x8x128xf32> to vector<8x128xf32>
    %56 = vector.shape_cast %53 : vector<8x128xf32> to vector<1x8x128xf32>
    tpu.vector_store %arg3[%c0_16, %c0_17, %c0_18], %56 {strides = array<i32>} : memref<1x8x128xf32, #tpu.memory_space<vmem>>, vector<1x8x128xf32>,
    return
  }
  func.func @transform_0(%arg0: i32) -> (i32, i32) {
    %c0_i32 = arith.constant 0 : i32
    %c0_i32_0 = arith.constant 0 : i32
    return %c0_i32, %arg0 : i32, i32
  }
  func.func @transform_1(%arg0: i32) -> (i32, i32) {
    %c0_i32 = arith.constant 0 : i32
    %c0_i32_0 = arith.constant 0 : i32
    return %c0_i32, %arg0 : i32, i32
  }
  func.func @transform_2(%arg0: i32) -> (i32, i32, i32) {
    %c0_i32 = arith.constant 0 : i32
    %c0_i32_0 = arith.constant 0 : i32
    %c0_i32_1 = arith.constant 0 : i32
    return %arg0, %c0_i32, %c0_i32_0 : i32, i32, i32
  }
}

</mosaic_0001>

<bundles_post_ra>
// kernel: tpu_custom_call.1
= control target key start
LH: loop header
LB: loop body
LE: loop exit
PB: predicated region body
PF: predicated region fallthrough
CT: control target
= control target key end

     0   :  { %7 = vsyncpa [#allocation3], 0  ;;  %s823_s0 = inlined_call_operand.hbm [shape: f32[10,384], index: 0, kind: input, shape index: {}]   ;;  %s824_s1 = inlined_call_operand.hbm [shape: s32[1,384], index: 1, kind: input, shape index: {}]   ;;  %s825_s2 = inlined_call_operand.hbm [shape: f32[3,8,128], index: 2, kind: output, shape index: {}]  }
   0x1   :  { %9 = vsyncpa [#allocation3 + $0x1], 0 }
   0x2   :  { %10 = vsyncpa [#allocation6], 0 }
   0x3   :  { %12 = vsyncpa [#allocation6 + $0x1], 0 }
   0x4   :  { %13 = vsyncpa [#allocation4], 0 }
   0x5   :  { %15 = vsyncpa [#allocation4 + $0x1], 0  ;;  %s613_s9 = smov 0   ;;  %s615_s10 = smov 0  }
   0x6   :  { %s617_s11 = smov 0   ;;  %s619_s12 = smov 0  }
   0x7 LB: > { %s634_s13 = sadd.s32 4294967295, %s590_s12   ;;  %s389_s14 = sadd.s32 4294967294, %s590_s12   ;;  %s590_s12 = sphi %s619_s12, %s842_s12   ;;  %s586_s11 = sphi %s617_s11, %s841_s11   ;;  %s582_s10 = sphi %s615_s10, %s840_s10   ;;  %s578_s9 = sphi %s613_s9, %s839_s9  }
   0x8   : > { %s638_s15 = sadd.s32 1, %s590_s12   ;;  %s28_s16 = sadd.s32 1, %s586_s11 }
   0x9   : > { %s25_s17 = ssub.s32 %s590_s12, %s638_s15  ;;  %p35_p0 = scmp.ne.s32.totalorder %s586_s11, %s582_s10 }
   0xa   : > { %p26_p1 = scmp.eq.s32.totalorder %s25_s17, 0  ;;  %p36_p2 = scmp.eq.s32.totalorder %s590_s12, 0 }
   0xb   : > { %p41_p3 = scmp.ne.s32.totalorder %s582_s10, %s578_s9  ;;  %p42_p4 = scmp.eq.s32.totalorder %s634_s13, 0 }
   0xc   : > { %s650_s18 = scalar_select %p26_p1, %s586_s11, %s28_s16  }
   0xd   : > { %p652_p5 = por %p36_p2, %p35_p0  ;;  %p656_p6 = por %p42_p4, %p41_p3 }
   0xe   : > { %p91_p7 = scmp.eq.s32.totalorder %s634_s13, 2  ;;  %p97_p8 = scmp.eq.s32.totalorder %s389_s14, 2 }
   0xf   : > { %s829_s20 = scalar_select %p656_p6, 1, 0 }
  0x10   : > { %p419_p9 = scmp.lt.s32.totalorder %s590_s12, 3  ;;  %p662_p10 = por %p91_p7, %p35_p0 }
  0x11   : > { %p666_p11 = por %p97_p8, %p41_p3  ;;  %s671_s23 = sand.u32 1, %s586_s11  }
  0x12   : > { %s830_s21 = scalar_select %p662_p10, 1, 0 }
  0x13   : > { %s831_s22 = scalar_select %p666_p11, 1, 0 }
  0x14   : > { %s393_s24 = sshll.u32 %s590_s12, 7  ;;  %s392_s25 = sshll.u32 %s671_s23, 4 }
  0x15   : > { %s678_s28 = scalar_lea.hbm %s823_s0, %s393_s24  ;;  %s121_s29 = scalar_lea.vmem [#allocation2], %s392_s25 }
  0x16   : > { %s127_s30 = sshll.u32 %s121_s29, 4  ;;  %p682_p12 = pnand %p419_p9, %p652_p5  ;;  %s686_s30 = int_to_ptr.vmem [resolvable:$true] %s127_s30 }
  0x17   : > { %s118_s4 = scalar_lea.sflag [#allocation3], %s671_s23  ;;  %s466_s5 = scalar_lea.hbm %s678_s28, 256 }
  0x18   : > { %p467_p0 = scmp.ne.s32.totalorder %s678_s28, %s466_s5  ;;  %p468_p1 = pneg %p682_p12 }
  0x19   : > { %s471_s8 = scalar_lea.hbm %s823_s0, 768  ;;  %p472_p4 = scmp.lt.s32.totalorder %s678_s28, %s823_s0 }
  0x1a   : > { %p469_p2 = pnand %p468_p1, %p467_p0  ;;  %p473_p5 = scmp.lt.s32.totalorder %s471_s8, %s466_s5 }
  0x1c   : > { %p470_p3 = pneg %p469_p2  ;;  %p474_p7 = por %p473_p5, %p472_p4 }
  0x1e   : > { %p475_p8 = pnand %p474_p7, %p470_p3 }
  0x20   : > { %478 = shalt.err (!%p475_p8)
}
  0x21   : > { %s479_s17 = scalar_lea.vmem %s686_s30, 256  ;;  %s592_s19 = smov [#allocation2]  }
  0x22   : > { %p480_p9 = scmp.ne.s32.totalorder %s686_s30, %s479_s17  ;;  %s484_s24 = sshll.u32 %s592_s19, 4  ;;  %s485_s24 = int_to_ptr.vmem [resolvable:$false] %s484_s24 }
  0x23   : > { %s486_s25 = scalar_lea.vmem %s485_s24, 512  ;;  %p487_p13 = scmp.lt.s32.totalorder %s686_s30, %s485_s24 }
  0x24   : > { %p482_p0 = pnand %p480_p9, %p468_p1  ;;  %p488_p11 = scmp.lt.s32.totalorder %s486_s25, %s479_s17 }
  0x26   : > { %p483_p2 = pneg %p482_p0  ;;  %p489_p10 = por %p488_p11, %p487_p13 }
  0x28   : > { %p490_p4 = pnand %p489_p10, %p483_p2 }
  0x2a   : > { %493 = shalt.err (!%p490_p4)
}
  0x2b   : > { %s593_s26 = smov 384   ;;  %s594_s27 = smov 128  }
  0x2c   : > { %s595_s29 = smov 8   ;;  %p152_p3 = scmp.lt.s32.totalorder %s590_s12, 4 }
  0x2d   : > { %411 = dma.hbm_to_vmem [thread:$0]  (!%p682_p12), %s678_s28, 256, %s686_s30, %s118_s4, %s593_s26, %s594_s27, %s595_s29  }
  0x2e   : > { %s394_s5 = sshll.u32 %s590_s12, 4  ;;  %p833_p10 = scmp.ge.s32.totalorder %s590_s12, 1 }
  0x2f   : > { %s727_s14 = scalar_lea.hbm %s824_s1, %s394_s5  ;;  %s140_s16 = scalar_lea.vmem [#allocation5], %s671_s23 }
  0x30   : > { %p720_p11 = pnand %p833_p10, %p152_p3  ;;  %s147_s17 = sshll.u32 %s140_s16, 4  ;;  %s148_s17 = int_to_ptr.vmem [resolvable:$true] %s147_s17 }
  0x31   : > { %s138_s19 = scalar_lea.sflag [#allocation6], %s671_s23  ;;  %s494_s28 = scalar_lea.hbm %s727_s14, 16 }
  0x32   : > { %s834_s6 = scalar_select %p720_p11, 1, 0 }
  0x33   : > { %p495_p13 = scmp.ne.s32.totalorder %s727_s14, %s494_s28  ;;  %s499_s24 = scalar_lea.hbm %s824_s1, 48 }
  0x34   : > { %p500_p8 = scmp.lt.s32.totalorder %s727_s14, %s824_s1  ;;  %p501_p9 = scmp.lt.s32.totalorder %s499_s24, %s494_s28 }
  0x35   : > { %p497_p5 = pnand %p495_p13, %p468_p1 }
  0x36   : > { %p502_p0 = por %p501_p9, %p500_p8 }
  0x37   : > { %p498_p7 = pneg %p497_p5 }
  0x39   : > { %p503_p2 = pnand %p502_p0, %p498_p7 }
  0x3b   : > { %506 = shalt.err (!%p503_p2)
}
  0x3c   : > { %s507_s27 = scalar_lea.vmem %s148_s17, 16  ;;  %s596_s23 = smov [#allocation5]  }
  0x3d   : > { %p508_p4 = scmp.ne.s32.totalorder %s148_s17, %s507_s27  ;;  %s512_s29 = sshll.u32 %s596_s23, 4  ;;  %s513_s29 = int_to_ptr.vmem [resolvable:$false] %s512_s29 }
  0x3e   : > { %s514_s5 = scalar_lea.vmem %s513_s29, 32  ;;  %p515_p13 = scmp.lt.s32.totalorder %s148_s17, %s513_s29 }
  0x3f   : > { %p510_p3 = pnand %p508_p4, %p468_p1  ;;  %p516_p5 = scmp.lt.s32.totalorder %s514_s5, %s507_s27 }
  0x41   : > { %p511_p10 = pneg %p510_p3  ;;  %p517_p6 = por %p516_p5, %p515_p13 }
  0x43   : > { %p518_p11 = pnand %p517_p6, %p511_p10 }
  0x45   : > { %521 = shalt.err (!%p518_p11)
}
  0x46   : > { %414 = dma.hbm_to_vmem [thread:$0]  (!%p682_p12), %s727_s14, 16, %s148_s17, %s138_s19  }
  0x47   : > { %p835_p7 = scmp.ne.s32.totalorder %s834_s6, 0 }
  0x48   : > { %s752_s7 = sand.u32 (!%p835_p7), 1, %s582_s10   ;;  %p836_p1 = scmp.ne.s32.totalorder (!%p835_p7), %s829_s20, 0 }
  0x49   : > { %156 = sbr.rel (%p835_p7) target bundleno = 328 (0x148), region = 28  ;;  %s396_s8 = sshll.u32 (!%p835_p7), %s752_s7, 4 }
  0x4a   : > { %s159_s16 = scalar_lea.sflag (!%p835_p7), [#allocation3], %s752_s7  ;;  %s162_s28 = scalar_lea.vmem (!%p835_p7), [#allocation2], %s396_s8 }
  0x4e   : > { %565 = dma.done.wait (%p836_p1), %s159_s16, 256  }
  0x4f   : > { %567 = vsyncadd (%p836_p1), %s159_s16, 4294967040  ;;  %s168_s3 = scalar_lea.sflag [#allocation6], %s752_s7  ;;  %s170_s6 = scalar_lea.vmem [#allocation5], %s752_s7 }
  0x50   : > { %569 = dma.done.wait (%p836_p1), %s168_s3, 16  }
  0x51   : > { %571 = vsyncadd (%p836_p1), %s168_s3, 4294967280  ;;  %vm207_vm0 = vcmask 1041408   ;;  %v195_v0 = vld [vmem:[%s162_s28] sm:$0xff]  ;;  %v196_v1 = vld [vmem:[%s162_s28 + $0x8] sm:$0x3]  ;;  %v198_v3 = vlaneseq  ;;  %vm264_vm4 = vcmask 1040384  }
  0x52   : > { %v208_v2 = vsel %vm207_vm0, %v196_v1, -inf  ;;  %v197_v11 = vld [vmem:[%s170_s6] sm:$0x1]  ;;  %s397_s20 = sshll.u32 %s752_s7, 3  ;;  %s399_s14 = sshll.u32 %s634_s13, 7 }
  0x53   : > { %v209_v4 = vmax.f32 %v195_v0, %v208_v2  ;;  %v767_v6 = vshrl.u32 %v198_v3, 7  ;;  %vm262_vm3 = vcmp.ge.s32.totalorder %v197_v11, 0  ;;  %s194_s17 = scalar_lea.vmem [#allocation7], %s397_s20  ;;  %s787_s24 = scalar_lea.hbm %s825_s2, %s399_s14 }
  0x54   : > { %s299_s19 = sshll.u32 %s194_s17, 4  ;;  %s286_s25 = scalar_lea.sflag [#allocation4], %s752_s7  ;;  %s300_s19 = int_to_ptr.vmem [resolvable:$true] %s299_s19 }
  0x55   : > { %v210_v5 = vrot.slane %v209_v4, 4  ;;  %v770_v9 = vsub.s32 0, %v767_v6  ;;  %v200_v13 = vadd.s32 8, %v767_v6  ;;  %vm273_vm5 = vcmp.eq.s32.totalorder %v767_v6, 1  ;;  %s522_s26 = scalar_lea.vmem %s300_s19, 128  ;;  %p837_p12 = scmp.ne.s32.totalorder %s830_s21, 0 }
  0x56   : > { %vm272_vm6 = vcmp.eq.s32.totalorder %v767_v6, 0  ;;  %p523_p6 = scmp.ne.s32.totalorder %s300_s19, %s522_s26  ;;  %s597_s13 = smov [#allocation7]  }
  0x57   : > { %v211_v7 = vmax.f32 %v209_v4, %v210_v5  ;;  %v204_v14 = vrot.slane %v197_v11, %v770_v9  ;;  %s526_s27 = sshll.u32 %s597_s13, 4  ;;  %s527_s27 = int_to_ptr.vmem [resolvable:$false] %s526_s27 }
  0x58   : > { %p524_p11 = pnand %p523_p6, %p837_p12  ;;  %s528_s23 = scalar_lea.vmem %s527_s27, 256 }
  0x59   : > { %v212_v8 = vrot.slane %v211_v7, 2  ;;  %vm206_vm1 = vcmp.eq.s32.totalorder %v200_v13, %v204_v14  ;;  %vm205_vm2 = vcmp.eq.s32.totalorder %v767_v6, %v204_v14  ;;  %p529_p9 = scmp.lt.s32.totalorder %s300_s19, %s527_s27  ;;  %p530_p0 = scmp.lt.s32.totalorder %s528_s23, %s522_s26 }
  0x5a   : > { %p525_p8 = pneg %p524_p11 }
  0x5b   : > { %v213_v10 = vmax.f32 %v211_v7, %v212_v8  ;;  %p531_p2 = por %p530_p0, %p529_p9 }
  0x5d   : > { %v214_v12 = vrot.slane %v213_v10, 1  ;;  %p532_p4 = pnand %p531_p2, %p525_p8 }
  0x5f   : > { %v215_v15 = vmax.f32 %v213_v10, %v214_v12 }
  0x61   : > { %v216_v16 = vsub.f32 %v195_v0, %v215_v15  ;;  %v217_v17 = vsub.f32 %v196_v1, %v215_v15 }
  0x63   : > { %v228_v18 = vmul.f32 1.442695, %v216_v16  ;;  %v230_v19 = vmul.f32 1.442695, %v217_v17  ;;  %v219_v20 = vsel %vm206_vm1, %v217_v17, 0.0  ;;  %v218_v21 = vsel %vm205_vm2, %v216_v16, 0.0 }
  0x64   : > { %v220_v22 = vsel %vm207_vm0, %v219_v20, 0.0 }
  0x65   : > { %456 = vpow2.f32 %v228_v18  ;;  %v221_v23 = vadd.f32 %v220_v22, %v218_v21 }
  0x66   : > { %458 = vpow2.f32 %v230_v19 }
  0x67   : > { %v222_v24 = vrot.slane %v221_v23, 4 }
  0x69   : > { %v223_v27 = vadd.f32 %v222_v24, %v221_v23 }
  0x6b   : > { %v224_v31 = vrot.slane %v223_v27, 2 }
  0x6d   : > { %v225_v34 = vadd.f32 %v224_v31, %v223_v27 }
  0x6f   : > { %v226_v37 = vrot.slane %v225_v34, 1 }
  0x71   : > { %v227_v39 = vadd.f32 %v226_v37, %v225_v34 }
  0x72   : > { %v457_v25 = vpop.eup %456 }
  0x73   : > { %v459_v26 = vpop.eup %458  ;;  %v256_v40 = vmul.f32 1.442695, %v227_v39 }
  0x74   : > { %v232_v28 = vsel %vm207_vm0, %v459_v26, 0.0 }
  0x75   : > { %v233_v29 = vadd.f32 %v457_v25, %v232_v28 }
  0x77   : > { %v234_v30 = vrot.slane %v233_v29, 4 }
  0x79   : > { %v235_v32 = vadd.f32 %v234_v30, %v233_v29 }
  0x7b   : > { %v236_v33 = vrot.slane %v235_v32, 2 }
  0x7d   : > { %v237_v35 = vadd.f32 %v236_v33, %v235_v32 }
  0x7f   : > { %v238_v36 = vrot.slane %v237_v35, 1 }
  0x81   : > { %v239_v38 = vadd.f32 %v238_v36, %v237_v35 }
  0x83   : > { %460 = vrcp.f32 %v239_v38 }
  0x84   : > { %462 = vpow2.f32 %v256_v40 }
  0x85   : > { %464 = vlog2.f32 %v239_v38 }
  0x90   : > { %v461_v41 = vpop.eup %460 }
  0x91   : > { %v244_v42 = vmul.f32 %v461_v41, %v457_v25  ;;  %v245_v43 = vmul.f32 %v461_v41, %v459_v26  ;;  %v463_v49 = vpop.eup %462 }
  0x92   : > { %v258_v52 = vmul.f32 %v463_v49, %v461_v41  ;;  %v465_v53 = vpop.eup %464 }
  0x93   : > { %v246_v44 = vmax.f32 %v244_v42, 1e-07  ;;  %v247_v45 = vmax.f32 %v245_v43, 1e-07  ;;  %v242_v57 = vmul.f32 0.6931472, %v465_v53 }
  0x94   : > { %v259_v56 = vmax.f32 %v258_v52, 1e-07 }
  0x95   : > { %v248_v46 = vsel %vm207_vm0, %v247_v45, 0.0  ;;  %v243_v60 = vsub.f32 %v242_v57, %v227_v39 }
  0x96   : > { %v249_v47 = vadd.f32 %v248_v46, %v246_v44 }
  0x97   : > { %v263_v63 = vsel %vm262_vm3, %v243_v60, 0.0 }
  0x98   : > { %v250_v48 = vrot.slane %v249_v47, 4  ;;  %v265_v1 = vsel %vm264_vm4, %v263_v63, 0.0 }
  0x9a   : > { %v251_v50 = vadd.f32 %v250_v48, %v249_v47 }
  0x9c   : > { %v252_v51 = vrot.slane %v251_v50, 2 }
  0x9e   : > { %v253_v54 = vadd.f32 %v252_v51, %v251_v50 }
  0xa0   : > { %v254_v55 = vrot.slane %v253_v54, 1 }
  0xa2   : > { %v255_v58 = vadd.f32 %v254_v55, %v253_v54 }
  0xa4   : > { %v260_v59 = vsub.f32 %v255_v58, %v259_v56 }
  0xa6   : > { %v261_v61 = vmul.f32 9.2103405, %v260_v59 }
  0xa8   : > { %v268_v62 = vsel %vm262_vm3, %v261_v61, 0.0 }
  0xa9   : > { %v269_v0 = vsel %vm264_vm4, %v268_v62, 0.0 }
  0xaa   : > { %270 = vadd.xlane.f32.xlu0 %v269_v0 }
  0xae   : > { %266 = vadd.xlane.f32.xlu0 %v265_v1 }
 0x133   : > { %v271_v2 = vpop.xlane.xlu0 %270 }
 0x134   : > { %v277_v3 = vrot.slane %v271_v2, %v770_v9 }
 0x136   : > { %v278_v7 = vsel %vm273_vm5, %v277_v3, 0.0 }
 0x137   : > { %v267_v4 = vpop.xlane.xlu0 %266 }
 0x138   : > { %v282_v5 = vrot.slane %v267_v4, %v770_v9 }
 0x13a   : > { %v283_v8 = vsel %vm272_vm6, %v282_v5, %v278_v7 }
 0x13b   : > { %284 = vst [vmem:[%s194_s17] sm:$0xff] %v283_v8 }
 0x13c   : > { %535 = shalt.err (!%p532_p4)
}
 0x13d   : > { %s536_s29 = scalar_lea.hbm %s787_s24, 128  ;;  %s540_s8 = scalar_lea.hbm %s825_s2, 384 }
 0x13e   : > { %p537_p3 = scmp.ne.s32.totalorder %s787_s24, %s536_s29  ;;  %p541_p5 = scmp.lt.s32.totalorder %s787_s24, %s825_s2 }
 0x13f   : > { %p542_p7 = scmp.lt.s32.totalorder %s540_s8, %s536_s29 }
 0x140   : > { %p538_p10 = pnand %p537_p3, %p837_p12 }
 0x141   : > { %p543_p1 = por %p542_p7, %p541_p5 }
 0x142   : > { %p539_p13 = pneg %p538_p10 }
 0x144   : > { %p544_p6 = pnand %p543_p1, %p539_p13 }
 0x146   : > { %547 = shalt.err (!%p544_p6)
}
 0x147   : > { %406 = dma.vmem_to_hbm [thread:$0]  (%p837_p12), %s300_s19, 128, %s787_s24, %s286_s25  }
 0x148 PF: > { %p420_p11 = scmp.ge.s32.totalorder %s590_s12, 2  ;;  %s311_s3 = sand.u32 1, %s578_s9  }
 0x149   : > { %p838_p8 = scmp.ne.s32.totalorder %s831_s22, 0  ;;  %s312_s6 = scalar_lea.sflag [#allocation4], %s311_s3 }
 0x14b   : > { %p416_p9 = pnand %p420_p11, %p838_p8 }
 0x14d   : > { %p417_p0 = pneg %p416_p9 }
 0x14f   : > { %573 = dma.done.wait (%p417_p0), %s312_s6, 128  }
 0x150   : > { %575 = vsyncadd (%p417_p0), %s312_s6, 4294967168  ;;  %p18_p2 = scmp.ge.s32.totalorder %s638_s15, 5   ;;  %s839_s9 = smov %s582_s10 }
 0x151   : > { %s840_s10 = smov %s586_s11  ;;  %s841_s11 = smov %s650_s18 }
 0x152   : > { %s842_s12 = smov %s638_s15  ;;  %20 = sbr.rel (!%p18_p2) target bundleno = 7 (0x7), region = 86 }
 0x157   :  { %317 = vsyncpa [#allocation3], 1 }
 0x158   :  { %319 = vsyncpa [#allocation3 + $0x1], 1 }
 0x159   :  { %320 = vsyncpa [#allocation6], 1 }
 0x15a   :  { %322 = vsyncpa [#allocation6 + $0x1], 1 }
 0x15b   :  { %323 = vsyncpa [#allocation4], 1 }
 0x15c   :  { %325 = vsyncpa [#allocation4 + $0x1], 1 }

</bundles_post_ra>
